<compile_context>
chip_gen: v7x
topology: tpu7x:2x2x1
jax: 0.10.0
libtpu: 0.0.40
codegen_flags: <defaults>
</compile_context>

<pallas_src>
import functools

import jax
import jax.numpy as jnp
from jax.experimental import pallas as pl
from jax.experimental.pallas import tpu as pltpu


def _conv_bn_relu_kernel(x_ref, w_ref, shift_ref, o_ref, xp_ref, *, K, P, relu):
    # x_ref:     (1, H, W*Cin)        bf16  unpadded input rows (W,Cin flattened)
    # w_ref:     (K, W*Cin, W*Cout)   bf16  BN-scale-folded block-Toeplitz weights
    # shift_ref: (1, W*Cout)          f32   per-channel shift tiled over W
    # o_ref:     (1, H, W*Cout)             output rows (lane-dense last dim)
    # xp_ref:    (H + 2P, W*Cin)      f32   VMEM scratch with vertical halo rows
    H = x_ref.shape[1]
    WCin = x_ref.shape[2]
    WCout = o_ref.shape[2]
    Hp = H + 2 * P

    # Vertical zero halo (redone every grid step: negligible cost, megacore-safe).
    if P > 0:
        zeros_halo = jnp.zeros((P, WCin), xp_ref.dtype)
        xp_ref[0:P, :] = zeros_halo
        xp_ref[Hp - P:Hp, :] = zeros_halo
    xp_ref[P:P + H, :] = x_ref[0].astype(xp_ref.dtype)

    # K row-tap MXU matmuls, bf16 operands, f32 accumulation (static unroll).
    acc = jnp.zeros((H, WCout), jnp.float32)
    for kh in range(K):
        lhs = xp_ref[kh:kh + H, :].astype(jnp.bfloat16)
        acc += jnp.dot(lhs, w_ref[kh], preferred_element_type=jnp.float32)

    y = acc + shift_ref[...]          # BN shift + conv bias (scale folded into w)
    if relu:
        y = jnp.maximum(y, 0.0)
    o_ref[...] = y.reshape(1, H, WCout).astype(o_ref.dtype)


def conv_block_forward(x_nchw, conv_w_oihw, conv_b, bn_gamma, bn_beta,
                       bn_mean, bn_var, *, kernel_size=3, relu=True, eps=1e-5):
    """Fused Conv2d + BatchNorm2d(eval) + ReLU. Input/output in NCHW."""
    assert kernel_size in (1, 3)
    K = kernel_size
    P = 1 if K == 3 else 0

    N, Cin, H, W = x_nchw.shape
    Cout = conv_w_oihw.shape[0]
    WCin, WCout = W * Cin, W * Cout

    # ---- wrapper glue (plain JAX, once per call) ----------------------------
    # BN(eval) folded into conv:  y = conv_nobias(x) * scale + shift
    scale = bn_gamma / jnp.sqrt(bn_var + eps)                     # (Cout,)
    shift = bn_beta + (conv_b - bn_mean) * scale                  # (Cout,)
    shift_row = jnp.tile(shift, W).reshape(1, WCout).astype(jnp.float32)

    # weights -> (K, K, Cin, Cout), BN scale folded into the output channels
    w_kkio = (jnp.transpose(conv_w_oihw, (2, 3, 1, 0)).astype(jnp.float32)
              * scale[None, None, None, :])

    # Block-Toeplitz matrix per vertical tap kh:
    #   w_mat[kh, wi*Cin + ci, wo*Cout + co] = w[co, ci, kh, wi - wo + P] * scale[co]
    # Horizontal zero-padding of the conv is expressed by rows that stay zero.
    w_mat = jnp.zeros((K, WCin, WCout), jnp.float32)
    for kw in range(K):
        for wo in range(W):
            wi = wo + kw - P
            if 0 <= wi < W:
                w_mat = w_mat.at[:, wi * Cin:(wi + 1) * Cin,
                                 wo * Cout:(wo + 1) * Cout].set(w_kkio[:, kw])
    w_mat = w_mat.astype(jnp.bfloat16)

    # input: NCHW -> (N, H, W*Cin), bf16 on the wire (halves input HBM bytes)
    x_rows = jnp.transpose(x_nchw, (0, 2, 3, 1)).reshape(N, H, WCin)
    x_rows = x_rows.astype(jnp.bfloat16)

    kernel = functools.partial(_conv_bn_relu_kernel, K=K, P=P, relu=relu)

    out_rows = pl.pallas_call(
        kernel,
        out_shape=jax.ShapeDtypeStruct((N, H, WCout), x_nchw.dtype),
        grid_spec=pltpu.PrefetchScalarGridSpec(
            num_scalar_prefetch=0,
            grid=(N,),
            in_specs=[
                pl.BlockSpec((1, H, WCin), lambda n: (n, 0, 0)),
                pl.BlockSpec((K, WCin, WCout), lambda n: (0, 0, 0)),
                pl.BlockSpec((1, WCout), lambda n: (0, 0)),
            ],
            out_specs=pl.BlockSpec((1, H, WCout), lambda n: (n, 0, 0)),
            scratch_shapes=[pltpu.VMEM((H + 2 * P, WCin), jnp.float32)],
        ),
        compiler_params=pltpu.CompilerParams(
            dimension_semantics=("parallel",),
        ),
    )(x_rows, w_mat, shift_row)

    # (N, H, W*Cout) -> (N, H, W, Cout) -> NCHW
    return jnp.transpose(out_rows.reshape(N, H, W, Cout), (0, 3, 1, 2))


def _reference(x_nchw, conv_w_oihw, conv_b, bn_gamma, bn_beta, bn_mean, bn_var,
               *, kernel_size=3, relu=True, eps=1e-5):
    """Pure-JAX f32 reference (lax conv + eval-mode BN + ReLU), NCHW."""
    P = 1 if kernel_size == 3 else 0
    y = jax.lax.conv_general_dilated(
        x_nchw.astype(jnp.float32), conv_w_oihw.astype(jnp.float32),
        window_strides=(1, 1), padding=((P, P), (P, P)),
        dimension_numbers=("NCHW", "OIHW", "NCHW"),
    )
    y = y + conv_b.reshape(1, -1, 1, 1)
    y = (y - bn_mean.reshape(1, -1, 1, 1)) / jnp.sqrt(
        bn_var.reshape(1, -1, 1, 1) + eps)
    y = y * bn_gamma.reshape(1, -1, 1, 1) + bn_beta.reshape(1, -1, 1, 1)
    if relu:
        y = jnp.maximum(y, 0.0)
    return y.astype(x_nchw.dtype)


if __name__ == "__main__":
    # Small shapes consistent with the module: N=2, Cin=4, Cout=8, 16x16, k=3.
    N, Cin, Cout, H, W, K = 2, 4, 8, 16, 16, 3

    key = jax.random.PRNGKey(0)
    kx, kw, kb = jax.random.split(key, 3)

    x = jax.random.normal(kx, (N, Cin, H, W), dtype=jnp.float32)

    # nn.init.kaiming_normal_(mode='fan_out', nonlinearity='relu'):
    # std = sqrt(2 / fan_out), fan_out = Cout * K * K
    fan_out = Cout * K * K
    conv_w = jax.random.normal(kw, (Cout, Cin, K, K), dtype=jnp.float32) * jnp.sqrt(
        2.0 / fan_out)
    # Conv2d default bias init: U(-1/sqrt(fan_in), 1/sqrt(fan_in)), fan_in = Cin*K*K
    fan_in = Cin * K * K
    bound = 1.0 / jnp.sqrt(fan_in)
    conv_b = jax.random.uniform(kb, (Cout,), minval=-bound, maxval=bound,
                                dtype=jnp.float32)

    # BatchNorm2d __init__ state: weight=1, bias=0, running_mean=0, running_var=1
    bn_gamma = jnp.ones((Cout,), jnp.float32)
    bn_beta = jnp.zeros((Cout,), jnp.float32)
    bn_mean = jnp.zeros((Cout,), jnp.float32)
    bn_var = jnp.ones((Cout,), jnp.float32)

    out = conv_block_forward(x, conv_w, conv_b, bn_gamma, bn_beta, bn_mean,
                             bn_var, kernel_size=K, relu=True)
    out = jax.block_until_ready(out)

    ref = _reference(x, conv_w, conv_b, bn_gamma, bn_beta, bn_mean, bn_var,
                     kernel_size=K, relu=True)

    assert out.shape == (N, Cout, H, W)
    # bf16 MXU operands -> tolerance loosened vs a pure-f32 implementation.
    max_err = float(jnp.max(jnp.abs(out - ref)))
    assert jnp.allclose(out, ref, atol=5e-2, rtol=5e-2), max_err

    print("KERNEL_OK")
</pallas_src>

<mosaic_0001>
module attributes {stable_mosaic.version = 11 : i64} {
  func.func @_conv_bn_relu_kernel(%arg0: i32, %arg1: memref<1x16x64xbf16, #tpu.memory_space<vmem>>, %arg2: memref<3x64x128xbf16, #tpu.memory_space<vmem>>, %arg3: memref<1x128xf32, #tpu.memory_space<vmem>>, %arg4: memref<1x16x128xf32, #tpu.memory_space<vmem>>, %arg5: memref<18x64xf32, #tpu.memory_space<vmem>>) attributes {dimension_semantics = [#tpu.dimension_semantics<parallel>], iteration_bounds = array<i64: 2>, scalar_prefetch = 0 : i64, scratch_operands = 1 : i64, tpu.core_type = #tpu.core_type<tc>, window_params = [{transform_indices = @transform_0, window_bounds = array<i64: 1, 16, 64>}, {pipeline_mode = #tpu.pipeline_mode<synchronous>, transform_indices = @transform_1, window_bounds = array<i64: 3, 64, 128>}, {pipeline_mode = #tpu.pipeline_mode<synchronous>, transform_indices = @transform_2, window_bounds = array<i64: 1, 128>}, {transform_indices = @transform_3, window_bounds = array<i64: 1, 16, 128>}]} {
    %cst = arith.constant 0.000000e+00 : f32
    %0 = vector.broadcast %cst : f32 to vector<1x64xf32>
    %c0 = arith.constant 0 : index
    %c0_0 = arith.constant 0 : index
    %1 = vector.load %arg5[%c0, %c0_0] : memref<18x64xf32, #tpu.memory_space<vmem>>, vector<1x64xf32>
    tpu.vector_store %arg5[%c0, %c0_0], %0 {strides = array<i32>} : memref<18x64xf32, #tpu.memory_space<vmem>>, vector<1x64xf32>,
    %c17 = arith.constant 17 : index
    %c0_1 = arith.constant 0 : index
    %2 = vector.load %arg5[%c17, %c0_1] : memref<18x64xf32, #tpu.memory_space<vmem>>, vector<1x64xf32>
    tpu.vector_store %arg5[%c17, %c0_1], %0 {strides = array<i32>} : memref<18x64xf32, #tpu.memory_space<vmem>>, vector<1x64xf32>,
    %c0_2 = arith.constant 0 : index
    %c0_3 = arith.constant 0 : index
    %c0_4 = arith.constant 0 : index
    %3 = vector.load %arg1[%c0_2, %c0_3, %c0_4] : memref<1x16x64xbf16, #tpu.memory_space<vmem>>, vector<1x16x64xbf16>
    %4 = vector.shape_cast %3 : vector<1x16x64xbf16> to vector<16x64xbf16>
    %5 = arith.extf %4 : vector<16x64xbf16> to vector<16x64xf32>
    %c1 = arith.constant 1 : index
    %c0_5 = arith.constant 0 : index
    %6 = vector.load %arg5[%c1, %c0_5] : memref<18x64xf32, #tpu.memory_space<vmem>>, vector<16x64xf32>
    tpu.vector_store %arg5[%c1, %c0_5], %5 {strides = array<i32>} : memref<18x64xf32, #tpu.memory_space<vmem>>, vector<16x64xf32>,
    %cst_6 = arith.constant 0.000000e+00 : f32
    %7 = vector.broadcast %cst_6 : f32 to vector<16x128xf32>
    %c0_7 = arith.constant 0 : index
    %c0_8 = arith.constant 0 : index
    %8 = vector.load %arg5[%c0_7, %c0_8] : memref<18x64xf32, #tpu.memory_space<vmem>>, vector<16x64xf32>
    %9 = arith.truncf %8 : vector<16x64xf32> to vector<16x64xbf16>
    %c0_9 = arith.constant 0 : index
    %c0_10 = arith.constant 0 : index
    %c0_11 = arith.constant 0 : index
    %10 = vector.load %arg2[%c0_9, %c0_10, %c0_11] : memref<3x64x128xbf16, #tpu.memory_space<vmem>>, vector<1x64x128xbf16>
    %11 = vector.shape_cast %10 : vector<1x64x128xbf16> to vector<64x128xbf16>
    %cst_12 = arith.constant dense<0.000000e+00> : vector<16x128xf32>
    %12 = tpu.matmul %9, %11, %cst_12 {dimension_numbers = #tpu.dot_dimension_numbers<[1], [0], [0], [1], [0, 0, 1, 1], [], []>} : vector<16x64xbf16>, vector<64x128xbf16>, vector<16x128xf32> -> vector<16x128xf32>
    %13 = arith.addf %7, %12 : vector<16x128xf32>
    %c1_13 = arith.constant 1 : index
    %c0_14 = arith.constant 0 : index
    %14 = vector.load %arg5[%c1_13, %c0_14] : memref<18x64xf32, #tpu.memory_space<vmem>>, vector<16x64xf32>
    %15 = arith.truncf %14 : vector<16x64xf32> to vector<16x64xbf16>
    %c1_15 = arith.constant 1 : index
    %c0_16 = arith.constant 0 : index
    %c0_17 = arith.constant 0 : index
    %16 = vector.load %arg2[%c1_15, %c0_16, %c0_17] : memref<3x64x128xbf16, #tpu.memory_space<vmem>>, vector<1x64x128xbf16>
    %17 = vector.shape_cast %16 : vector<1x64x128xbf16> to vector<64x128xbf16>
    %cst_18 = arith.constant dense<0.000000e+00> : vector<16x128xf32>
    %18 = tpu.matmul %15, %17, %cst_18 {dimension_numbers = #tpu.dot_dimension_numbers<[1], [0], [0], [1], [0, 0, 1, 1], [], []>} : vector<16x64xbf16>, vector<64x128xbf16>, vector<16x128xf32> -> vector<16x128xf32>
    %19 = arith.addf %13, %18 : vector<16x128xf32>
    %c2 = arith.constant 2 : index
    %c0_19 = arith.constant 0 : index
    %20 = vector.load %arg5[%c2, %c0_19] : memref<18x64xf32, #tpu.memory_space<vmem>>, vector<16x64xf32>
    %21 = arith.truncf %20 : vector<16x64xf32> to vector<16x64xbf16>
    %c2_20 = arith.constant 2 : index
    %c0_21 = arith.constant 0 : index
    %c0_22 = arith.constant 0 : index
    %22 = vector.load %arg2[%c2_20, %c0_21, %c0_22] : memref<3x64x128xbf16, #tpu.memory_space<vmem>>, vector<1x64x128xbf16>
    %23 = vector.shape_cast %22 : vector<1x64x128xbf16> to vector<64x128xbf16>
    %cst_23 = arith.constant dense<0.000000e+00> : vector<16x128xf32>
    %24 = tpu.matmul %21, %23, %cst_23 {dimension_numbers = #tpu.dot_dimension_numbers<[1], [0], [0], [1], [0, 0, 1, 1], [], []>} : vector<16x64xbf16>, vector<64x128xbf16>, vector<16x128xf32> -> vector<16x128xf32>
    %25 = arith.addf %19, %24 : vector<16x128xf32>
    %c0_24 = arith.constant 0 : index
    %c0_25 = arith.constant 0 : index
    %26 = vector.load %arg3[%c0_24, %c0_25] : memref<1x128xf32, #tpu.memory_space<vmem>>, vector<1x128xf32>
    %27 = vector.broadcast %26 : vector<1x128xf32> to vector<16x128xf32>
    %28 = arith.addf %25, %27 : vector<16x128xf32>
    %cst_26 = arith.constant 0.000000e+00 : f32
    %29 = vector.broadcast %cst_26 : f32 to vector<16x128xf32>
    %30 = arith.maximumf %28, %29 : vector<16x128xf32>
    %31 = vector.shape_cast %30 : vector<16x128xf32> to vector<1x16x128xf32>
    %c0_27 = arith.constant 0 : index
    %c0_28 = arith.constant 0 : index
    %c0_29 = arith.constant 0 : index
    %32 = vector.load %arg4[%c0_27, %c0_28, %c0_29] : memref<1x16x128xf32, #tpu.memory_space<vmem>>, vector<1x16x128xf32>
    tpu.vector_store %arg4[%c0_27, %c0_28, %c0_29], %31 {strides = array<i32>} : memref<1x16x128xf32, #tpu.memory_space<vmem>>, vector<1x16x128xf32>,
    return
  }
  func.func @transform_0(%arg0: i32) -> (i32, i32, i32) {
    %c0_i32 = arith.constant 0 : i32
    %c0_i32_0 = arith.constant 0 : i32
    %c0_i32_1 = arith.constant 0 : i32
    return %arg0, %c0_i32, %c0_i32_0 : i32, i32, i32
  }
  func.func @transform_1(%arg0: i32) -> (i32, i32, i32) {
    %c0_i32 = arith.constant 0 : i32
    %c0_i32_0 = arith.constant 0 : i32
    %c0_i32_1 = arith.constant 0 : i32
    %c0_i32_2 = arith.constant 0 : i32
    return %c0_i32, %c0_i32_0, %c0_i32_1 : i32, i32, i32
  }
  func.func @transform_2(%arg0: i32) -> (i32, i32) {
    %c0_i32 = arith.constant 0 : i32
    %c0_i32_0 = arith.constant 0 : i32
    %c0_i32_1 = arith.constant 0 : i32
    return %c0_i32, %c0_i32_0 : i32, i32
  }
  func.func @transform_3(%arg0: i32) -> (i32, i32, i32) {
    %c0_i32 = arith.constant 0 : i32
    %c0_i32_0 = arith.constant 0 : i32
    %c0_i32_1 = arith.constant 0 : i32
    return %arg0, %c0_i32, %c0_i32_0 : i32, i32, i32
  }
}

</mosaic_0001>

<bundles_post_ra>
// kernel: tpu_custom_call.1
= control target key start
LH: loop header
LB: loop body
LE: loop exit
PB: predicated region body
PF: predicated region fallthrough
CT: control target
= control target key end

     0   :  { %8 = vsyncpa [#allocation4], 0  ;;  %s1108_s0 = inlined_call_operand.hbm [shape: bf16[2,16,64], index: 0, kind: input, shape index: {}]   ;;  %s1109_s1 = inlined_call_operand.hbm [shape: bf16[3,64,128], index: 1, kind: input, shape index: {}]   ;;  %s1110_s2 = inlined_call_operand.vmem [shape: f32[1,128], index: 2, kind: input, shape index: {}]   ;;  %s1111_s3 = inlined_call_operand.hbm [shape: f32[2,16,128], index: 3, kind: output, shape index: {}]  }
   0x1   :  { %10 = vsyncpa [#allocation4 + $0x1], 0 }
   0x2   :  { %11 = vsyncpa [#allocation7], 0 }
   0x3   :  { %12 = vsyncpa [#allocation5], 0 }
   0x4   :  { %14 = vsyncpa [#allocation5 + $0x1], 0  ;;  %s889_s12 = smov 0   ;;  %s891_s13 = smov 0  }
   0x5   :  { %s893_s14 = smov 0   ;;  %s895_s15 = smov 0  }
   0x6 LB: > { %s910_s16 = sadd.s32 4294967295, %s858_s15   ;;  %s566_s17 = sadd.s32 4294967294, %s858_s15   ;;  %s858_s15 = sphi %s895_s15, %s1131_s15   ;;  %s854_s14 = sphi %s893_s14, %s1130_s14   ;;  %s850_s13 = sphi %s891_s13, %s1129_s13   ;;  %s846_s12 = sphi %s889_s12, %s1128_s12  }
   0x7   : > { %p40_p0 = scmp.ne.s32.totalorder %s850_s13, %s846_s12  ;;  %p1112_p1 = scmp.eq.s32.totalorder %s910_s16, 0 }
   0x8   : > { %p112_p3 = scmp.eq.s32.totalorder %s566_s17, 1  ;;  %p567_p5 = scmp.ge.s32.totalorder %s858_s15, 1 }
   0x9   : > { %p919_p4 = por %p1112_p1, %p40_p0  ;;  %p119_p7 = scmp.lt.s32.totalorder %s858_s15, 3 }
   0xa   : > { %p924_p6 = por %p112_p3, %p40_p0  ;;  %s860_s21 = smov [#allocation6]  }
   0xb   : > { %s1115_s18 = scalar_select %p919_p4, 1, 0 }
   0xc   : > { %s1116_s19 = scalar_select %p924_p6, 1, 0 }
   0xd   : > { %p929_p8 = pnand %p567_p5, %p119_p7  ;;  %s131_s22 = sshll.u32 %s860_s21, 4  ;;  %s933_s22 = int_to_ptr.vmem [resolvable:$true] %s131_s22 }
   0xe   : > { %s945_s24 = sadd.s32 1, %s858_s15   ;;  %s27_s25 = sadd.s32 1, %s854_s14 }
   0xf   : > { %s1117_s20 = scalar_select %p929_p8, 1, 0 }
  0x10   : > { %p663_p9 = pneg %p929_p8  ;;  %s24_s26 = ssub.s32 %s858_s15, %s945_s24 }
  0x11   : > { %s730_s29 = scalar_lea.hbm %s1109_s1, 1536 }
  0x12   : > { %p940_p11 = pnand %p663_p9, %p1112_p1  ;;  %p731_p12 = scmp.ne.s32.totalorder %s1109_s1, %s730_s29 }
  0x13   : > { %p737_p5 = scmp.lt.u32.totalorder %s730_s29, %s1109_s1 }
  0x14   : > { %p732_p13 = pneg %p940_p11 }
  0x16   : > { %p733_p0 = pnand %p732_p13, %p731_p12 }
  0x18   : > { %p734_p3 = pneg %p733_p0 }
  0x1a   : > { %p739_p7 = pnand %p737_p5, %p734_p3 }
  0x1c   : > { %742 = shalt.err (!%p739_p7)
}
  0x1d   : > { %s743_s7 = scalar_lea.vmem %s933_s22, 1536  ;;  %p751_p2 = scmp.lt.s32.totalorder %s933_s22, %s933_s22 }
  0x1e   : > { %p744_p9 = scmp.ne.s32.totalorder %s933_s22, %s743_s7  ;;  %p752_p6 = scmp.lt.s32.totalorder %s743_s7, %s743_s7 }
  0x20   : > { %p746_p10 = pnand %p744_p9, %p732_p13  ;;  %p753_p4 = por %p752_p6, %p751_p2 }
  0x22   : > { %p747_p1 = pneg %p746_p10 }
  0x24   : > { %p754_p8 = pnand %p753_p4, %p747_p1 }
  0x26   : > { %757 = shalt.err (!%p754_p8)
}
  0x27   : > { %s861_s8 = smov 64   ;;  %s862_s9 = smov 4  }
  0x28   : > { %666 = dma.hbm_to_vmem [thread:$0]  (!%p940_p11), %s1109_s1, 1536, %s933_s22, [#allocation7], %s861_s8, %s861_s8, %s862_s9  }
  0x29   : > { %p25_p1 = scmp.eq.s32.totalorder %s24_s26, 0  ;;  %p34_p2 = scmp.ne.s32.totalorder %s854_s14, %s850_s13 }
  0x2a   : > { %p35_p4 = scmp.eq.s32.totalorder %s858_s15, 0  ;;  %p676_p6 = scmp.lt.s32.totalorder %s858_s15, 2 }
  0x2b   : > { %s979_s17 = scalar_select %p25_p1, %s854_s14, %s27_s25  }
  0x2c   : > { %p36_p8 = por %p35_p4, %p34_p2  ;;  %p1119_p10 = scmp.eq.s32.totalorder %s910_s16, 1 }
  0x2d   : > { %s148_s23 = sand.u32 1, %s854_s14   ;;  %s598_s27 = sshll.u32 %s858_s15, 7 }
  0x2e   : > { %p983_p12 = por %p1119_p10, %p34_p2  ;;  %s570_s28 = sshll.u32 %s148_s23, 3 }
  0x2f   : > { %s992_s4 = scalar_lea.hbm %s1108_s0, %s598_s27  ;;  %s152_s22 = scalar_lea.vmem [#allocation3], %s570_s28 }
  0x30   : > { %s159_s25 = sshll.u32 %s152_s22, 4  ;;  %p994_p11 = pnand %p676_p6, %p36_p8  ;;  %s998_s25 = int_to_ptr.vmem [resolvable:$true] %s159_s25 }
  0x31   : > { %s1000_s5 = scalar_lea.sflag [#allocation4], %s148_s23  ;;  %s758_s6 = scalar_lea.hbm %s992_s4, 128 }
  0x32   : > { %p759_p13 = scmp.ne.s32.totalorder %s992_s4, %s758_s6  ;;  %p760_p0 = pneg %p994_p11 }
  0x33   : > { %s763_s11 = scalar_lea.hbm %s1108_s0, 256  ;;  %p764_p7 = scmp.lt.u32.totalorder %s992_s4, %s1108_s0 }
  0x34   : > { %p761_p3 = pnand %p760_p0, %p759_p13  ;;  %p765_p9 = scmp.lt.u32.totalorder %s763_s11, %s758_s6 }
  0x35   : > { %p767_p2 = scmp.lt.u32.totalorder %s758_s6, %s992_s4 }
  0x36   : > { %p762_p5 = pneg %p761_p3  ;;  %p766_p1 = por %p765_p9, %p764_p7 }
  0x38   : > { %p768_p4 = por %p767_p2, %p766_p1 }
  0x3a   : > { %p769_p6 = pnand %p768_p4, %p762_p5 }
  0x3c   : > { %772 = shalt.err (!%p769_p6)
}
  0x3d   : > { %s773_s23 = scalar_lea.vmem %s998_s25, 128  ;;  %s863_s29 = smov [#allocation3]  }
  0x3e   : > { %p774_p8 = scmp.ne.s32.totalorder %s998_s25, %s773_s23  ;;  %s778_s30 = sshll.u32 %s863_s29, 4  ;;  %s779_s30 = int_to_ptr.vmem [resolvable:$false] %s778_s30 }
  0x3f   : > { %s780_s22 = scalar_lea.vmem %s779_s30, 256  ;;  %p781_p3 = scmp.lt.s32.totalorder %s998_s25, %s779_s30 }
  0x40   : > { %p776_p10 = pnand %p774_p8, %p760_p0  ;;  %p782_p7 = scmp.lt.s32.totalorder %s780_s22, %s773_s23 }
  0x42   : > { %p777_p13 = pneg %p776_p10  ;;  %p783_p9 = por %p782_p7, %p781_p3 }
  0x44   : > { %p784_p1 = pnand %p783_p9, %p777_p13 }
  0x46   : > { %787 = shalt.err (!%p784_p1)
}
  0x47   : > { %670 = dma.hbm_to_vmem [thread:$0]  (!%p994_p11), %s992_s4, 128, %s998_s25, %s1000_s5, %s861_s8, %s861_s8, %s862_s9  }
  0x48   : > { %p1122_p0 = scmp.ne.s32.totalorder %s1117_s20, 0 }
  0x49   : > { %s1034_s6 = sand.u32 (!%p1122_p0), 1, %s850_s13   ;;  %p1123_p5 = scmp.ne.s32.totalorder (!%p1122_p0), %s1115_s18, 0 }
  0x4a   : > { %171 = sbr.rel (%p1122_p0) target bundleno = 354 (0x162), region = 32  ;;  %s574_s7 = sshll.u32 (!%p1122_p0), %s1034_s6, 3 }
  0x4b   : > { %s174_s10 = scalar_lea.sflag (!%p1122_p0), [#allocation4], %s1034_s6  ;;  %s177_s11 = scalar_lea.vmem (!%p1122_p0), [#allocation3], %s574_s7 }
  0x51   : > { %833 = dma.done.wait (%p1123_p5), %s174_s10, 128  }
  0x52   : > { %835 = vsyncadd (%p1123_p5), %s174_s10, 4294967168  ;;  %p1124_p2 = scmp.eq.s32.totalorder %s910_s16, 0 }
  0x54   : > { %837 = dma.done.wait (%p1124_p2), [#allocation7], 1536   ;;  %p1125_p11 = pmov %p1124_p2 }
  0x55   : > { %vm205_vm0 = vcmask 516096   ;;  %v864_v0 = vmov 0.0   ;;  %vm865_vm1 = vmmov 0   ;;  %v718_v1 = vld [vmem:[#allocation6 + $0x20] sm:$0xff]   ;;  %v720_v3 = vld [vmem:[#allocation6 + $0x28] sm:$0xff]   ;;  %v722_v5 = vld [vmem:[#allocation6 + $0x30] sm:$0xff]  }
  0x56   : > { %839 = vsyncadd (%p1125_p11), [#allocation7], 4294965760  ;;  %619 = vmatprep.subr.bf16.mxu0 %v864_v0  ;;  %631 = vmatprep.subr.bf16.mxu1 %v864_v0  ;;  %206 = vst.msk [vmem:[#allocation2] sm:$0x1] %vm205_vm0, %v864_v0  ;;  %v719_v2 = vld [vmem:[#allocation6] sm:$0xff]   ;;  %v721_v4 = vld [vmem:[#allocation6 + $0x8] sm:$0xff]  }
  0x57   : > { %207 = vst.msk [vmem:[#allocation2 + $0x11] sm:$0x1] %vm205_vm0, %v864_v0  ;;  %627 = vmatprep.mubr.msk.bf16.mxu0 %vm865_vm1, %v864_v0  ;;  %639 = vmatprep.mubr.msk.bf16.mxu1 %vm865_vm1, %v864_v0  ;;  %v723_v6 = vld [vmem:[#allocation6 + $0x10] sm:$0xff]   ;;  %vm212_vm2 = vcmask 523264   ;;  %v724_v10 = vld [vmem:[#allocation6 + $0x38] sm:$0xff]   ;;  %v726_v12 = vld [vmem:[#allocation6 + $0x40] sm:$0xff]  }
  0x58   : > { %620 = vmatpush3.bf16.msra.mxu0 %v718_v1  ;;  %632 = vmatpush3.bf16.msra.mxu1 %v719_v2  ;;  %v601_v7 = vld [vmem:[%s177_s11] sm:$0xff]   ;;  %v727_v19 = vld [vmem:[#allocation6 + $0x48] sm:$0xff]   ;;  %s576_s18 = sshll.u32 %s1034_s6, 4  ;;  %s599_s25 = sshll.u32 %s910_s16, 8 }
  0x59   : > { %621 = vmatprep.subr.bf16.mxu0 %v864_v0  ;;  %633 = vmatprep.subr.bf16.mxu1 %v864_v0  ;;  %v602_v8 = vunpack.c.l.bf16 %v601_v7  ;;  %v603_v9 = vunpack.c.h.bf16 %v601_v7  ;;  %v725_v11 = vld [vmem:[#allocation6 + $0x18] sm:$0xff]   ;;  %v728_v20 = vld [vmem:[#allocation6 + $0x50] sm:$0xff]   ;;  %s203_s9 = scalar_lea.vmem [#allocation8], %s576_s18  ;;  %s1064_s27 = scalar_lea.hbm %s1111_s3, %s599_s25 }
  0x5a   : > { %v729_v21 = vld [vmem:[#allocation6 + $0x58] sm:$0xff]   ;;  %s483_s4 = sshll.u32 %s203_s9, 4  ;;  %s470_s28 = scalar_lea.sflag [#allocation5], %s1034_s6  ;;  %s1059_s4 = int_to_ptr.vmem [resolvable:$true] %s483_s4 }
  0x5b   : > { %213 = vst.msk [vmem:[#allocation2 + $0x1] sm:$0xff] %vm212_vm2, %v602_v8  ;;  %214 = vst.msk [vmem:[#allocation2 + $0x9] sm:$0xff] %vm212_vm2, %v603_v9  ;;  %v592_v36 = vld [vmem:[%s1110_s2] ss:$0 sm:$0xff]  ;;  %s788_s23 = scalar_lea.vmem %s1059_s4, 256  ;;  %s866_s16 = smov [#allocation8]  }
  0x5c   : > { %622 = vmatpush3.bf16.msra.mxu0 %v720_v3  ;;  %634 = vmatpush3.bf16.msra.mxu1 %v721_v4  ;;  %p789_p4 = scmp.ne.s32.totalorder %s1059_s4, %s788_s23  ;;  %s792_s29 = sshll.u32 %s866_s16, 4  ;;  %s793_s29 = int_to_ptr.vmem [resolvable:$false] %s792_s29 }
  0x5d   : > { %623 = vmatprep.subr.bf16.mxu0 %v864_v0  ;;  %635 = vmatprep.subr.bf16.mxu1 %v864_v0  ;;  %s794_s30 = scalar_lea.vmem %s793_s29, 512  ;;  %p795_p10 = scmp.lt.s32.totalorder %s1059_s4, %s793_s29 }
  0x5e   : > { %p790_p6 = pnand %p789_p4, %p983_p12  ;;  %p796_p13 = scmp.lt.s32.totalorder %s794_s30, %s788_s23 }
  0x60   : > { %624 = vmatpush3.bf16.msra.mxu0 %v722_v5  ;;  %636 = vmatpush3.bf16.msra.mxu1 %v723_v6  ;;  %p791_p8 = pneg %p790_p6  ;;  %p797_p3 = por %p796_p13, %p795_p10 }
  0x61   : > { %625 = vmatprep.subr.bf16.mxu0 %v864_v0  ;;  %637 = vmatprep.subr.bf16.mxu1 %v864_v0 }
  0x62   : > { %v226_v13 = vld [vmem:[#allocation2 + $0x1] sm:$0xff]  ;;  %v227_v14 = vld [vmem:[#allocation2 + $0x9] sm:$0xff]  ;;  %p798_p7 = pnand %p797_p3, %p791_p8 }
  0x63   : > { %v215_v15 = vld [vmem:[#allocation2] sm:$0xff]  ;;  %v228_v16 = vpack.c.bf16 %v227_v14, %v226_v13  ;;  %v216_v17 = vld [vmem:[#allocation2 + $0x8] sm:$0xff] }
  0x64   : > { %626 = vmatpush3.bf16.msra.mxu0 %v724_v10  ;;  %638 = vmatpush3.bf16.msra.mxu1 %v725_v11  ;;  %v217_v18 = vpack.c.bf16 %v216_v17, %v215_v15  ;;  %v374_v22 = vld [vmem:[#allocation2 + $0x2] sm:$0xff]  ;;  %v375_v23 = vld [vmem:[#allocation2 + $0xa] sm:$0xff] }
  0x65   : > { %643 = vmatprep.subr.bf16.mxu0 %v864_v0  ;;  %v376_v24 = vpack.c.bf16 %v375_v23, %v374_v22 }
  0x67   : > { %628 = vmatmul.mubr.msk.bf16.vlgmr.msra.gmra.mrb[0].mxu0 %vm212_vm2, %v228_v16  ;;  %640 = vmatmul.mubr.msk.bf16.vlgmr.msra.gmra.mrb[0].mxu1 %vm212_vm2, %v217_v18 }
  0x68   : > { %644 = vmatpush3.bf16.msra.mxu0 %v726_v12  ;;  %651 = vmatprep.mubr.msk.bf16.mxu0 %vm865_vm1, %v864_v0 }
  0x69   : > { %645 = vmatprep.subr.bf16.mxu0 %v864_v0 }
  0x6c   : > { %646 = vmatpush3.bf16.msra.mxu0 %v727_v19 }
  0x6d   : > { %647 = vmatprep.subr.bf16.mxu0 %v864_v0 }
  0x70   : > { %648 = vmatpush3.bf16.msra.mxu0 %v728_v20 }
  0x71   : > { %649 = vmatprep.subr.bf16.mxu0 %v864_v0 }
  0x74   : > { %650 = vmatpush3.bf16.msra.mxu0 %v729_v21 }
  0x77   : > { %652 = vmatmul.mubr.msk.bf16.vlgmr.msra.gmra.mrb[4].mxu0 %vm212_vm2, %v376_v24 }
 0x13a   : > { %v299_v25 = vpop.f32.mrb[0].mxu0  ;;  %v367_v26 = vpop.f32.mrb[0].mxu1 }
 0x13b   : > { %v629_v27 = vpop.f32.mrb[1].mxu0  ;;  %v368_v28 = vadd.f32 %v367_v26, %v299_v25  ;;  %v641_v29 = vpop.f32.mrb[1].mxu1 }
 0x13c   : > { %v302_v30 = vpop.f32.mrb[2].mxu0  ;;  %v370_v31 = vpop.f32.mrb[2].mxu1 }
 0x13d   : > { %v630_v32 = vpop.f32.mrb[3].mxu0  ;;  %v371_v33 = vadd.f32 %v370_v31, %v302_v30  ;;  %v642_v34 = vpop.f32.mrb[3].mxu1 }
 0x14a   : > { %v447_v35 = vpop.f32.mrb[4].mxu0 }
 0x14b   : > { %v454_v37 = vadd.f32 %v447_v35, %v368_v28  ;;  %v653_v38 = vpop.f32.mrb[5].mxu0 }
 0x14c   : > { %v450_v39 = vpop.f32.mrb[6].mxu0 }
 0x14d   : > { %v463_v40 = vadd.f32 %v592_v36, %v454_v37  ;;  %v455_v41 = vadd.f32 %v450_v39, %v371_v33  ;;  %v654_v42 = vpop.f32.mrb[7].mxu0 }
 0x14f   : > { %v465_v43 = vmax.f32 %v463_v40, 0.0  ;;  %v464_v44 = vadd.f32 %v592_v36, %v455_v41 }
 0x151   : > { %467 = vst [vmem:[%s203_s9] sm:$0xff] %v465_v43  ;;  %v466_v45 = vmax.f32 %v464_v44, 0.0 }
 0x153   : > { %468 = vst [vmem:[%s203_s9 + $0x8] sm:$0xff] %v466_v45 }
 0x154   : > { %801 = shalt.err (!%p798_p7)
}
 0x155   : > { %s802_s22 = scalar_lea.hbm %s1064_s27, 256  ;;  %s806_s11 = scalar_lea.hbm %s1111_s3, 512 }
 0x156   : > { %p803_p9 = scmp.ne.s32.totalorder %s1064_s27, %s802_s22  ;;  %p807_p5 = scmp.lt.u32.totalorder %s1064_s27, %s1111_s3 }
 0x157   : > { %p808_p2 = scmp.lt.u32.totalorder %s806_s11, %s802_s22  ;;  %p810_p4 = scmp.lt.u32.totalorder %s802_s22, %s1064_s27 }
 0x158   : > { %p804_p1 = pnand %p803_p9, %p983_p12 }
 0x159   : > { %p809_p11 = por %p808_p2, %p807_p5 }
 0x15a   : > { %p805_p0 = pneg %p804_p1 }
 0x15b   : > { %p811_p6 = por %p810_p4, %p809_p11 }
 0x15d   : > { %p812_p8 = pnand %p811_p6, %p805_p0 }
 0x15f   : > { %815 = shalt.err (!%p812_p8)
}
 0x160   : > { %s867_s8 = smov 128   ;;  %s868_s9 = smov 8  }
 0x161   : > { %661 = dma.vmem_to_hbm [thread:$0]  (%p983_p12), %s1059_s4, 256, %s1064_s27, %s470_s28, %s867_s8, %s867_s8, %s868_s9  }
 0x162 PF: > { %s498_s25 = sand.u32 1, %s846_s12   ;;  %p1126_p10 = scmp.ne.s32.totalorder %s1116_s19, 0 }
 0x163   : > { %p1127_p13 = scmp.ge.s32.totalorder %s858_s15, 2  ;;  %s499_s26 = scalar_lea.sflag [#allocation5], %s498_s25 }
 0x165   : > { %p672_p3 = pnand %p1127_p13, %p1126_p10 }
 0x167   : > { %841 = dma.done.wait (!%p672_p3), %s499_s26, 256  }
 0x168   : > { %843 = vsyncadd (!%p672_p3), %s499_s26, 4294967040  ;;  %p17_p7 = scmp.ge.s32.totalorder %s945_s24, 4   ;;  %s1128_s12 = smov %s850_s13 }
 0x169   : > { %s1129_s13 = smov %s854_s14  ;;  %s1130_s14 = smov %s979_s17 }
 0x16a   : > { %s1131_s15 = smov %s945_s24  ;;  %19 = sbr.rel (!%p17_p7) target bundleno = 6 (0x6), region = 83 }
 0x171   :  { %504 = vsyncpa [#allocation4], 1 }
 0x172   :  { %506 = vsyncpa [#allocation4 + $0x1], 1 }
 0x173   :  { %507 = vsyncpa [#allocation7], 1 }
 0x174   :  { %508 = vsyncpa [#allocation5], 1 }
 0x175   :  { %510 = vsyncpa [#allocation5 + $0x1], 1 }

</bundles_post_ra>
